<compile_context>
chip_gen: v7x
topology: tpu7x:2x2x1
jax: 0.10.0
libtpu: 0.0.40
codegen_flags: <defaults>
</compile_context>

<pallas_src>
import functools

import jax
import jax.numpy as jnp
from jax.experimental import pallas as pl
from jax.experimental.pallas import tpu as pltpu

DIM = 2
N_LT = DIM * (DIM + 1) // 2   # 3 lower-triangular channels for dim == 2
SLAB_ROWS = 8                 # [grid0, grid1, yemb0, yemb1, ylt0, ylt1, ylt2, ones]


# --------------------------------------------------------------------------- #
# Sweep 1: per-instance moment accumulation (grid = (B, n_ptiles)).
# mom1[n] = gt[n] @ slab.T  -> [Σgt·g0, Σgt·g1, Σgt·e0, Σgt·e1, Σgt·l0, Σgt·l1, Σgt·l2, Σgt]
# mom2[n] = gt[n] @ (slab*slab).T (cols 4..6 are Σgt·l_c², rest unused filler)
# --------------------------------------------------------------------------- #
def _stats_kernel(slab_ref, gt_ref, mom1_ref, mom2_ref):
    t = pl.program_id(1)

    @pl.when(t == 0)
    def _init():
        mom1_ref[...] = jnp.zeros_like(mom1_ref)
        mom2_ref[...] = jnp.zeros_like(mom2_ref)

    slab = slab_ref[0]                        # (8, Pt) f32
    gt = gt_ref[0].astype(jnp.float32)        # (N, Pt) bf16 one-hot in HBM -> f32

    dn = (((1,), (1,)), ((), ()))             # contract over the lane (pixel) axis
    mom1_ref[0] += jax.lax.dot_general(gt, slab, dn,
                                       preferred_element_type=jnp.float32)
    mom2_ref[0] += jax.lax.dot_general(gt, slab * slab, dn,
                                       preferred_element_type=jnp.float32)


# --------------------------------------------------------------------------- #
# Sweep 2: per-pixel probabilities / logits (grid = (B, n_ptiles), fully parallel).
# params[n] = [center0, center1, c00, 2*c01, c11, 0, 0, 0]
# --------------------------------------------------------------------------- #
def _logits_kernel(params_ref, slab_ref, logits_ref):
    params = params_ref[0]                    # (N, 8)
    slab = slab_ref[0]                        # (8, Pt)

    c0 = params[:, 0:1]
    c1 = params[:, 1:2]
    a00 = params[:, 2:3]
    a01x2 = params[:, 3:4]                    # 2*c01 pre-hoisted in the wrapper
    a11 = params[:, 4:5]

    d0 = slab[2:3, :] - c0                    # (N, Pt) embedding diffs
    d1 = slab[3:4, :] - c1
    e0 = d0 * d0
    e1 = d1 * d1
    # quadratic form on the squared diffs (matches the reference exactly)
    q = (a00 * e0 + a01x2 * e1) * e0 + (a11 * e1) * e1
    probs = jnp.exp(-q)
    logits_ref[0] = (2.0 * probs - 1.0).astype(logits_ref.dtype)


# --------------------------------------------------------------------------- #
# Lovasz-hinge (per_image=False) — sort / cumsum tail kept in plain JAX.
# --------------------------------------------------------------------------- #
def _lovasz_hinge_flat(logits, labels):
    signs = 2.0 * labels - 1.0
    errors = 1.0 - logits * signs
    order = jnp.argsort(-errors)                         # descending
    errors_sorted = errors[order]
    gt_sorted = labels[order]
    gts = jnp.sum(gt_sorted)
    intersection = gts - jnp.cumsum(gt_sorted)
    union = gts + jnp.cumsum(1.0 - gt_sorted)
    jaccard = 1.0 - intersection / union
    grad = jnp.concatenate([jaccard[:1], jaccard[1:] - jaccard[:-1]])
    return jnp.dot(jnp.maximum(errors_sorted, 0.0), grad)


# --------------------------------------------------------------------------- #
# Wrapper
# --------------------------------------------------------------------------- #
def instance_embedding_loss(grid_chw, y_embeddings, y_lower_triangular,
                            gt_one_hot, *, tile_p=4096):
    B, _, H, W = y_embeddings.shape
    N = gt_one_hot.shape[1]
    P = H * W

    # Spatial (lane) tile: multiple of 128, clamped to the padded extent.
    tile_p = max(128, ((min(tile_p, P) + 127) // 128) * 128)
    n_tiles = pl.cdiv(P, tile_p)
    p_pad = n_tiles * tile_p

    grid_f = jnp.broadcast_to(
        grid_chw.reshape(1, DIM, P).astype(jnp.float32), (B, DIM, P))
    yemb_f = y_embeddings.reshape(B, DIM, P).astype(jnp.float32)
    ylt_f = y_lower_triangular.reshape(B, N_LT, P).astype(jnp.float32)
    gt_f = gt_one_hot.reshape(B, N, P).astype(jnp.float32)

    # One lane-dense (B, 8, P) slab: grid(2) + y_emb(2) + y_lt(3) + ones(1).
    slab = jnp.concatenate(
        [grid_f, yemb_f, ylt_f, jnp.ones((B, 1, P), jnp.float32)], axis=1)
    gt_bf16 = gt_f.astype(jnp.bfloat16)       # exact for 0/1 masks, halves the DMA

    if p_pad != P:
        pad = ((0, 0), (0, 0), (0, p_pad - P))
        slab = jnp.pad(slab, pad)
        gt_bf16 = jnp.pad(gt_bf16, pad)       # zero padding: excluded from all sums

    # ---- sweep 1: per-instance moments --------------------------------------
    mom1, mom2 = pl.pallas_call(
        _stats_kernel,
        out_shape=(jax.ShapeDtypeStruct((B, N, SLAB_ROWS), jnp.float32),
                   jax.ShapeDtypeStruct((B, N, SLAB_ROWS), jnp.float32)),
        grid_spec=pltpu.PrefetchScalarGridSpec(
            num_scalar_prefetch=0,
            grid=(B, n_tiles),
            in_specs=[
                pl.BlockSpec((1, SLAB_ROWS, tile_p), lambda b, t: (b, 0, t)),
                pl.BlockSpec((1, N, tile_p), lambda b, t: (b, 0, t)),
            ],
            out_specs=[
                pl.BlockSpec((1, N, SLAB_ROWS), lambda b, t: (b, 0, 0)),
                pl.BlockSpec((1, N, SLAB_ROWS), lambda b, t: (b, 0, 0)),
            ],
        ),
        compiler_params=pltpu.CompilerParams(
            dimension_semantics=("parallel", "arbitrary"),
            vmem_limit_bytes=32 * 1024 * 1024,   # safe on v5e/v6e/v7x at this tile
        ),
    )(slab, gt_bf16)

    # ---- tiny O(B*N) per-instance algebra: centers, variance, covariance ----
    size = mom1[:, :, 7:8]
    inv_size = jnp.where(size > 0, 1.0 / size, 0.0)     # guard empty instances
    centers = mom1[:, :, 0:2] * inv_size                # (B, N, 2)
    lt_mean = mom1[:, :, 4:7] * inv_size                # (B, N, 3)
    lt_sq_mean = mom2[:, :, 4:7] * inv_size
    lt_var = jnp.maximum(lt_sq_mean - lt_mean * lt_mean, 0.0)   # E[x²]-mean²

    m0, m1v, m2v = lt_mean[..., 0], lt_mean[..., 1], lt_mean[..., 2]
    a00 = m0 * m0                       # cov = L @ L.T, L = [[m0,0],[m1,m2]]
    a01x2 = 2.0 * m0 * m1v
    a11 = m1v * m1v + m2v * m2v
    zeros = jnp.zeros_like(a00)
    params = jnp.stack([centers[..., 0], centers[..., 1],
                        a00, a01x2, a11, zeros, zeros, zeros], axis=-1)  # (B,N,8)

    # ---- sweep 2: per-pixel logits -------------------------------------------
    logits = pl.pallas_call(
        _logits_kernel,
        out_shape=jax.ShapeDtypeStruct((B, N, p_pad), jnp.bfloat16),
        grid_spec=pltpu.PrefetchScalarGridSpec(
            num_scalar_prefetch=0,
            grid=(B, n_tiles),
            in_specs=[
                pl.BlockSpec((1, N, SLAB_ROWS), lambda b, t: (b, 0, 0)),
                pl.BlockSpec((1, SLAB_ROWS, tile_p), lambda b, t: (b, 0, t)),
            ],
            out_specs=pl.BlockSpec((1, N, tile_p), lambda b, t: (b, 0, t)),
        ),
        compiler_params=pltpu.CompilerParams(
            dimension_semantics=("parallel", "parallel"),
            vmem_limit_bytes=32 * 1024 * 1024,
        ),
    )(params, slab)

    logits = logits[:, :, :P].astype(jnp.float32)       # drop spatial padding

    # Lovasz-hinge tail (per_image=False): flatten (N, H, W) per batch element.
    losses = jax.vmap(_lovasz_hinge_flat)(
        logits.reshape(B, N * P), gt_f.reshape(B, N * P))
    return jnp.mean(losses), jnp.mean(lt_var)


# --------------------------------------------------------------------------- #
# Pure-JAX reference mirroring the PyTorch forward (sanity check).
# --------------------------------------------------------------------------- #
def _reference_forward(grid_chw, y_embeddings, y_lower_triangular, gt_labels, n_inst):
    B, _, H, W = y_embeddings.shape
    losses, lt_vars = [], []
    for b in range(B):
        one_hot = (gt_labels[b][None, :, :] ==
                   jnp.arange(1, n_inst + 1)[:, None, None]).astype(jnp.float32)
        size = jnp.sum(one_hot, axis=(1, 2), keepdims=True)                 # (N,1,1)
        y_lt = y_lower_triangular[b]
        inst_lt = one_hot[None] * y_lt[:, None]                             # (3,N,H,W)
        lt_mean = jnp.sum(inst_lt, axis=(2, 3), keepdims=True) / size       # (3,N,1,1)
        lt_var = jnp.sum(((inst_lt - lt_mean) * one_hot[None]) ** 2,
                         axis=(2, 3), keepdims=True) / size[None]
        m = lt_mean[:, :, 0, 0]                                             # (3,N)
        m0, m1, m2 = m[0], m[1], m[2]
        cov = jnp.stack(
            [jnp.stack([m0 * m0, m0 * m1], axis=-1),
             jnp.stack([m0 * m1, m1 * m1 + m2 * m2], axis=-1)], axis=1)     # (N,2,2)
        centers = jnp.sum(one_hot[None] * grid_chw[:, None],
                          axis=(2, 3), keepdims=True) / size                # (2,N,1,1)
        similar = (y_embeddings[b][:, None] - centers) ** 2                 # (2,N,H,W)
        probs = []
        for i in range(n_inst):
            v = similar[:, i].reshape(DIM, -1)
            q = jnp.einsum('ap,ab,bp->p', v, cov[i], v)
            probs.append(jnp.exp(-q).reshape(1, H, W))
        probs = jnp.concatenate(probs, axis=0)
        logits = probs * 2.0 - 1.0
        losses.append(_lovasz_hinge_flat(logits.reshape(-1), one_hot.reshape(-1)))
        lt_vars.append(jnp.mean(lt_var))
    return jnp.mean(jnp.stack(losses)), jnp.mean(jnp.stack(lt_vars))


if __name__ == "__main__":
    B, H, W, N = 2, 16, 16, 4
    key = jax.random.PRNGKey(0)
    k1, k2 = jax.random.split(key)
    y_embeddings = jax.random.normal(k1, (B, DIM, H, W), jnp.float32)
    y_lower_triangular = jax.random.normal(k2, (B, N_LT, H, W), jnp.float32)

    yy, xx = jnp.meshgrid(jnp.arange(H, dtype=jnp.float32),
                          jnp.arange(W, dtype=jnp.float32), indexing="ij")
    grid_chw = jnp.stack([yy, xx], axis=0)                                  # (2,H,W)

    # Deterministic GT labels: 4 quadrant instances + a sparse background (0).
    hh = jnp.arange(H)[:, None]
    ww = jnp.arange(W)[None, :]
    labels = 1 + 2 * (hh >= H // 2) + (ww >= W // 2)
    labels = jnp.where((hh % 7 == 0) & (ww % 5 == 0), 0, labels)
    gt_labels = jnp.stack([labels, labels.T], axis=0).astype(jnp.int32)     # (B,H,W)

    gt_one_hot = (gt_labels[:, None, :, :] ==
                  jnp.arange(1, N + 1)[None, :, None, None]).astype(jnp.float32)

    # tile_p=128 at this toy size forces n_tiles=2 and exercises the
    # accumulate-across-P-tiles path; real workloads use the 4096 default.
    loss_fn = jax.jit(functools.partial(instance_embedding_loss, tile_p=128))
    loss, lt_var_loss = loss_fn(grid_chw, y_embeddings, y_lower_triangular, gt_one_hot)
    jax.block_until_ready((loss, lt_var_loss))

    ref_loss, ref_var = _reference_forward(
        grid_chw, y_embeddings, y_lower_triangular, gt_labels, N)
    assert abs(float(loss) - float(ref_loss)) < 5e-2, (float(loss), float(ref_loss))
    assert abs(float(lt_var_loss) - float(ref_var)) < 5e-2, (float(lt_var_loss), float(ref_var))

    print("KERNEL_OK")
</pallas_src>

<mosaic_0001>
module attributes {stable_mosaic.version = 11 : i64} {
  func.func private @main(%arg0: i32) attributes {dimension_semantics = [#tpu.dimension_semantics<core_parallel>], iteration_bounds = array<i64: 2>, tpu.core_type = #tpu.core_type<sc_scalar_subcore>, window_params = []} {
    return
  }
}

module attributes {stable_mosaic.version = 11 : i64} {
  func.func private @main(%arg0: i32) attributes {dimension_semantics = [#tpu.dimension_semantics<core_parallel>], iteration_bounds = array<i64: 2>, tpu.core_type = #tpu.core_type<sc_scalar_subcore>, window_params = []} {
    return
  }
}

module attributes {stable_mosaic.version = 11 : i64} {
  func.func @_stats_kernel(%arg0: i32, %arg1: i32, %arg2: memref<1x8x128xf32, #tpu.memory_space<vmem>>, %arg3: memref<1x4x128xbf16, #tpu.memory_space<vmem>>, %arg4: memref<1x4x8xf32, #tpu.memory_space<vmem>>, %arg5: memref<1x4x8xf32, #tpu.memory_space<vmem>>) attributes {dimension_semantics = [#tpu.dimension_semantics<parallel>, #tpu.dimension_semantics<arbitrary>], iteration_bounds = array<i64: 2, 2>, scalar_prefetch = 0 : i64, scratch_operands = 0 : i64, tpu.core_type = #tpu.core_type<tc>, window_params = [{transform_indices = @transform_0, window_bounds = array<i64: 1, 8, 128>}, {transform_indices = @transform_1, window_bounds = array<i64: 1, 4, 128>}, {transform_indices = @transform_2, window_bounds = array<i64: 1, 4, 8>}, {transform_indices = @transform_3, window_bounds = array<i64: 1, 4, 8>}]} {
    %c0_i32 = arith.constant 0 : i32
    %0 = arith.cmpi eq, %arg1, %c0_i32 : i32
    %1 = arith.extui %0 : i1 to i32
    %c0_i32_0 = arith.constant 0 : i32
    %2 = arith.cmpi ne, %1, %c0_i32_0 : i32
    scf.if %2 {
      %cst_19 = arith.constant 0.000000e+00 : f32
      %23 = vector.broadcast %cst_19 : f32 to vector<1x4x8xf32>
      %c0_20 = arith.constant 0 : index
      %c0_21 = arith.constant 0 : index
      %c0_22 = arith.constant 0 : index
      %24 = vector.load %arg4[%c0_20, %c0_21, %c0_22] : memref<1x4x8xf32, #tpu.memory_space<vmem>>, vector<1x4x8xf32>
      tpu.vector_store %arg4[%c0_20, %c0_21, %c0_22], %23 {strides = array<i32>} : memref<1x4x8xf32, #tpu.memory_space<vmem>>, vector<1x4x8xf32>,
      %cst_23 = arith.constant 0.000000e+00 : f32
      %25 = vector.broadcast %cst_23 : f32 to vector<1x4x8xf32>
      %c0_24 = arith.constant 0 : index
      %c0_25 = arith.constant 0 : index
      %c0_26 = arith.constant 0 : index
      %26 = vector.load %arg5[%c0_24, %c0_25, %c0_26] : memref<1x4x8xf32, #tpu.memory_space<vmem>>, vector<1x4x8xf32>
      tpu.vector_store %arg5[%c0_24, %c0_25, %c0_26], %25 {strides = array<i32>} : memref<1x4x8xf32, #tpu.memory_space<vmem>>, vector<1x4x8xf32>,
    } else {
    }
    %c0 = arith.constant 0 : index
    %c0_1 = arith.constant 0 : index
    %c0_2 = arith.constant 0 : index
    %3 = vector.load %arg2[%c0, %c0_1, %c0_2] : memref<1x8x128xf32, #tpu.memory_space<vmem>>, vector<1x8x128xf32>
    %4 = vector.shape_cast %3 : vector<1x8x128xf32> to vector<8x128xf32>
    %c0_3 = arith.constant 0 : index
    %c0_4 = arith.constant 0 : index
    %c0_5 = arith.constant 0 : index
    %5 = vector.load %arg3[%c0_3, %c0_4, %c0_5] : memref<1x4x128xbf16, #tpu.memory_space<vmem>>, vector<1x4x128xbf16>
    %6 = vector.shape_cast %5 : vector<1x4x128xbf16> to vector<4x128xbf16>
    %7 = arith.extf %6 : vector<4x128xbf16> to vector<4x128xf32>
    %c0_6 = arith.constant 0 : index
    %c0_7 = arith.constant 0 : index
    %c0_8 = arith.constant 0 : index
    %8 = vector.load %arg4[%c0_6, %c0_7, %c0_8] : memref<1x4x8xf32, #tpu.memory_space<vmem>>, vector<1x4x8xf32>
    %9 = vector.shape_cast %8 : vector<1x4x8xf32> to vector<4x8xf32>
    %cst = arith.constant dense<0.000000e+00> : vector<4x8xf32>
    %10 = tpu.matmul %7, %4, %cst {dimension_numbers = #tpu.dot_dimension_numbers<[1], [1], [0], [0], [0, 0, 1, 0], [], []>} : vector<4x128xf32>, vector<8x128xf32>, vector<4x8xf32> -> vector<4x8xf32>
    %11 = arith.addf %9, %10 : vector<4x8xf32>
    %c0_9 = arith.constant 0 : index
    %c0_10 = arith.constant 0 : index
    %c0_11 = arith.constant 0 : index
    %12 = vector.load %arg4[%c0_9, %c0_10, %c0_11] : memref<1x4x8xf32, #tpu.memory_space<vmem>>, vector<1x4x8xf32>
    %13 = vector.shape_cast %12 : vector<1x4x8xf32> to vector<4x8xf32>
    %14 = vector.shape_cast %11 : vector<4x8xf32> to vector<1x4x8xf32>
    tpu.vector_store %arg4[%c0_9, %c0_10, %c0_11], %14 {strides = array<i32>} : memref<1x4x8xf32, #tpu.memory_space<vmem>>, vector<1x4x8xf32>,
    %c0_12 = arith.constant 0 : index
    %c0_13 = arith.constant 0 : index
    %c0_14 = arith.constant 0 : index
    %15 = vector.load %arg5[%c0_12, %c0_13, %c0_14] : memref<1x4x8xf32, #tpu.memory_space<vmem>>, vector<1x4x8xf32>
    %16 = vector.shape_cast %15 : vector<1x4x8xf32> to vector<4x8xf32>
    %17 = arith.mulf %4, %4 : vector<8x128xf32>
    %cst_15 = arith.constant dense<0.000000e+00> : vector<4x8xf32>
    %18 = tpu.matmul %7, %17, %cst_15 {dimension_numbers = #tpu.dot_dimension_numbers<[1], [1], [0], [0], [0, 0, 1, 0], [], []>} : vector<4x128xf32>, vector<8x128xf32>, vector<4x8xf32> -> vector<4x8xf32>
    %19 = arith.addf %16, %18 : vector<4x8xf32>
    %c0_16 = arith.constant 0 : index
    %c0_17 = arith.constant 0 : index
    %c0_18 = arith.constant 0 : index
    %20 = vector.load %arg5[%c0_16, %c0_17, %c0_18] : memref<1x4x8xf32, #tpu.memory_space<vmem>>, vector<1x4x8xf32>
    %21 = vector.shape_cast %20 : vector<1x4x8xf32> to vector<4x8xf32>
    %22 = vector.shape_cast %19 : vector<4x8xf32> to vector<1x4x8xf32>
    tpu.vector_store %arg5[%c0_16, %c0_17, %c0_18], %22 {strides = array<i32>} : memref<1x4x8xf32, #tpu.memory_space<vmem>>, vector<1x4x8xf32>,
    return
  }
  func.func @transform_0(%arg0: i32, %arg1: i32) -> (i32, i32, i32) {
    %c0_i32 = arith.constant 0 : i32
    %c0_i32_0 = arith.constant 0 : i32
    return %arg0, %c0_i32, %arg1 : i32, i32, i32
  }
  func.func @transform_1(%arg0: i32, %arg1: i32) -> (i32, i32, i32) {
    %c0_i32 = arith.constant 0 : i32
    %c0_i32_0 = arith.constant 0 : i32
    return %arg0, %c0_i32, %arg1 : i32, i32, i32
  }
  func.func @transform_2(%arg0: i32, %arg1: i32) -> (i32, i32, i32) {
    %c0_i32 = arith.constant 0 : i32
    %c0_i32_0 = arith.constant 0 : i32
    %c0_i32_1 = arith.constant 0 : i32
    return %arg0, %c0_i32, %c0_i32_0 : i32, i32, i32
  }
  func.func @transform_3(%arg0: i32, %arg1: i32) -> (i32, i32, i32) {
    %c0_i32 = arith.constant 0 : i32
    %c0_i32_0 = arith.constant 0 : i32
    %c0_i32_1 = arith.constant 0 : i32
    return %arg0, %c0_i32, %c0_i32_0 : i32, i32, i32
  }
}

module attributes {stable_mosaic.version = 11 : i64} {
  func.func @_logits_kernel(%arg0: i32, %arg1: i32, %arg2: memref<1x4x8xf32, #tpu.memory_space<vmem>>, %arg3: memref<1x8x128xf32, #tpu.memory_space<vmem>>, %arg4: memref<1x4x128xbf16, #tpu.memory_space<vmem>>) attributes {dimension_semantics = [#tpu.dimension_semantics<parallel>, #tpu.dimension_semantics<parallel>], iteration_bounds = array<i64: 2, 2>, scalar_prefetch = 0 : i64, scratch_operands = 0 : i64, tpu.core_type = #tpu.core_type<tc>, window_params = [{transform_indices = @transform_0, window_bounds = array<i64: 1, 4, 8>}, {transform_indices = @transform_1, window_bounds = array<i64: 1, 8, 128>}, {transform_indices = @transform_2, window_bounds = array<i64: 1, 4, 128>}]} {
    %c0 = arith.constant 0 : index
    %c0_0 = arith.constant 0 : index
    %c0_1 = arith.constant 0 : index
    %0 = vector.load %arg2[%c0, %c0_0, %c0_1] : memref<1x4x8xf32, #tpu.memory_space<vmem>>, vector<1x4x8xf32>
    %1 = vector.shape_cast %0 : vector<1x4x8xf32> to vector<4x8xf32>
    %c0_2 = arith.constant 0 : index
    %c0_3 = arith.constant 0 : index
    %c0_4 = arith.constant 0 : index
    %2 = vector.load %arg3[%c0_2, %c0_3, %c0_4] : memref<1x8x128xf32, #tpu.memory_space<vmem>>, vector<1x8x128xf32>
    %3 = vector.shape_cast %2 : vector<1x8x128xf32> to vector<8x128xf32>
    %4 = vector.extract_strided_slice %1 {offsets = [0, 0], sizes = [4, 1], strides = [1, 1]} : vector<4x8xf32> to vector<4x1xf32>
    %5 = vector.extract_strided_slice %1 {offsets = [0, 1], sizes = [4, 1], strides = [1, 1]} : vector<4x8xf32> to vector<4x1xf32>
    %6 = vector.extract_strided_slice %1 {offsets = [0, 2], sizes = [4, 1], strides = [1, 1]} : vector<4x8xf32> to vector<4x1xf32>
    %7 = vector.extract_strided_slice %1 {offsets = [0, 3], sizes = [4, 1], strides = [1, 1]} : vector<4x8xf32> to vector<4x1xf32>
    %8 = vector.extract_strided_slice %1 {offsets = [0, 4], sizes = [4, 1], strides = [1, 1]} : vector<4x8xf32> to vector<4x1xf32>
    %9 = vector.extract_strided_slice %3 {offsets = [2, 0], sizes = [1, 128], strides = [1, 1]} : vector<8x128xf32> to vector<1x128xf32>
    %10 = vector.broadcast %9 : vector<1x128xf32> to vector<4x128xf32>
    %11 = vector.broadcast %4 : vector<4x1xf32> to vector<4x128xf32>
    %12 = arith.subf %10, %11 : vector<4x128xf32>
    %13 = vector.extract_strided_slice %3 {offsets = [3, 0], sizes = [1, 128], strides = [1, 1]} : vector<8x128xf32> to vector<1x128xf32>
    %14 = vector.broadcast %13 : vector<1x128xf32> to vector<4x128xf32>
    %15 = vector.broadcast %5 : vector<4x1xf32> to vector<4x128xf32>
    %16 = arith.subf %14, %15 : vector<4x128xf32>
    %17 = arith.mulf %12, %12 : vector<4x128xf32>
    %18 = arith.mulf %16, %16 : vector<4x128xf32>
    %19 = vector.broadcast %6 : vector<4x1xf32> to vector<4x128xf32>
    %20 = arith.mulf %19, %17 : vector<4x128xf32>
    %21 = vector.broadcast %7 : vector<4x1xf32> to vector<4x128xf32>
    %22 = arith.mulf %21, %18 : vector<4x128xf32>
    %23 = arith.addf %20, %22 : vector<4x128xf32>
    %24 = arith.mulf %23, %17 : vector<4x128xf32>
    %25 = vector.broadcast %8 : vector<4x1xf32> to vector<4x128xf32>
    %26 = arith.mulf %25, %18 : vector<4x128xf32>
    %27 = arith.mulf %26, %18 : vector<4x128xf32>
    %28 = arith.addf %24, %27 : vector<4x128xf32>
    %cst = arith.constant 0.000000e+00 : f32
    %29 = vector.broadcast %cst : f32 to vector<4x128xf32>
    %30 = arith.subf %29, %28 : vector<4x128xf32>
    %31 = math.exp %30 : vector<4x128xf32>
    %cst_5 = arith.constant 2.000000e+00 : f32
    %32 = vector.broadcast %cst_5 : f32 to vector<4x128xf32>
    %33 = arith.mulf %32, %31 : vector<4x128xf32>
    %cst_6 = arith.constant 1.000000e+00 : f32
    %34 = vector.broadcast %cst_6 : f32 to vector<4x128xf32>
    %35 = arith.subf %33, %34 : vector<4x128xf32>
    %36 = arith.truncf %35 : vector<4x128xf32> to vector<4x128xbf16>
    %c0_7 = arith.constant 0 : index
    %c0_8 = arith.constant 0 : index
    %c0_9 = arith.constant 0 : index
    %37 = vector.load %arg4[%c0_7, %c0_8, %c0_9] : memref<1x4x128xbf16, #tpu.memory_space<vmem>>, vector<1x4x128xbf16>
    %38 = vector.shape_cast %37 : vector<1x4x128xbf16> to vector<4x128xbf16>
    %39 = vector.shape_cast %36 : vector<4x128xbf16> to vector<1x4x128xbf16>
    tpu.vector_store %arg4[%c0_7, %c0_8, %c0_9], %39 {strides = array<i32>} : memref<1x4x128xbf16, #tpu.memory_space<vmem>>, vector<1x4x128xbf16>,
    return
  }
  func.func @transform_0(%arg0: i32, %arg1: i32) -> (i32, i32, i32) {
    %c0_i32 = arith.constant 0 : i32
    %c0_i32_0 = arith.constant 0 : i32
    %c0_i32_1 = arith.constant 0 : i32
    return %arg0, %c0_i32, %c0_i32_0 : i32, i32, i32
  }
  func.func @transform_1(%arg0: i32, %arg1: i32) -> (i32, i32, i32) {
    %c0_i32 = arith.constant 0 : i32
    %c0_i32_0 = arith.constant 0 : i32
    return %arg0, %c0_i32, %arg1 : i32, i32, i32
  }
  func.func @transform_2(%arg0: i32, %arg1: i32) -> (i32, i32, i32) {
    %c0_i32 = arith.constant 0 : i32
    %c0_i32_0 = arith.constant 0 : i32
    return %arg0, %c0_i32, %arg1 : i32, i32, i32
  }
}

</mosaic_0001>

<bundles_post_ra>
// kernel: instance_embedding_loss.2
= control target key start
LH: loop header
LB: loop body
LE: loop exit
PB: predicated region body
PF: predicated region fallthrough
CT: control target
= control target key end

     0   :  { %s645_s12 = smov 0   ;;  %s647_s13 = smov 0   ;;  %s717_s0 = inlined_call_operand.vmem [shape: f32[2,8,256], index: 0, kind: input, shape index: {}]   ;;  %s718_s1 = inlined_call_operand.vmem [shape: bf16[2,4,256], index: 1, kind: input, shape index: {}]   ;;  %s719_s2 = inlined_call_operand.vmem [shape: f32[2,4,8], index: 2, kind: output, shape index: {0}]   ;;  %s720_s3 = inlined_call_operand.vmem [shape: f32[2,4,8], index: 3, kind: output, shape index: {1}]  }
   0x1   :  { %s649_s14 = smov 0   ;;  %s651_s15 = smov 0  }
   0x2   :  { %s653_s16 = smov 0  }
   0x3 LB: > { %s23_s17 = sadd.s32 1, %s612_s14  ;;  %s26_s18 = sadd.s32 1, %s616_s15  ;;  %s620_s16 = sphi %s653_s16, %s14_s16   ;;  %s616_s15 = sphi %s651_s15, %s724_s15   ;;  %s612_s14 = sphi %s649_s14, %s723_s14   ;;  %s608_s13 = sphi %s647_s13, %s722_s13   ;;  %s604_s12 = sphi %s645_s12, %s721_s12  }
   0x4   : > { %p24_p0 = scmp.ge.s32.totalorder %s23_s17, 2  ;;  %p515_p1 = scmp.ge.s32.totalorder %s620_s16, 1 }
   0x5   : > { %p172_p2 = scmp.lt.s32.totalorder %s620_s16, 5 }
   0x6   : > { %s726_s17 = smov (%p24_p0, %s23_s17), 0  ;;  %s728_s18 = smov (!%p24_p0, %s26_s18), %s616_s15 }
   0x7   : > { %p173_p3 = pnand %p515_p1, %p172_p2  ;;  %p28_p4 = scmp.ge.s32.totalorder %s728_s18, 2 }
   0x8   : > { %p210_p5 = scmp.lt.s32.totalorder (!%p173_p3), %s608_s13, 1  ;;  %p212_p6 = scmp.lt.s32.totalorder (!%p173_p3), %s604_s12, 1 }
   0x9   : > { %s730_s18 = smov (%p28_p4, %s728_s18), 0  ;;  %176 = sbr.rel (%p173_p3) target bundleno = 245 (0xf5), region = 28 }
   0xa   : > { %p522_p7 = scmp.ne.s32.totalorder (!%p173_p3), %s604_s12, 0 }
  0x10   : > { %s732_s13 = smov (!%p210_p5, %s608_s13), 1  ;;  %237 = sbr.rel (%p522_p7) target bundleno = 24 (0x18), region = 32 }
  0x11   : > { %s213_s19 = scalar_select %p212_p6, %s604_s12, 1 }
  0x12   : > { %s516_s20 = sshll.u32 %s732_s13, 1  ;;  %s520_s21 = sshll.u32 %s732_s13, 2  ;;  %vm238_vm0 = vcmask (!%p522_p7), 60416   ;;  %v622_v0 = vmov (!%p522_p7), 0.0  }
  0x13   : > { %s215_s22 = sadd.s32 %s516_s20, %s213_s19  ;;  %s682_s25 = scalar_lea.vmem %s719_s2, %s520_s21 }
  0x14   : > { %s517_s26 = sshll.u32 %s215_s22, 3  ;;  %s519_s27 = sshll.u32 %s215_s22, 1  ;;  %239 = vst.msk [vmem:[%s682_s25] sm:$0xf] (!%p522_p7), %vm238_vm0, %v622_v0 }
  0x15   : > { %s217_s30 = scalar_lea.vmem %s717_s0, %s517_s26  ;;  %s225_s6 = scalar_lea.vmem %s718_s1, %s519_s27 }
  0x16   : > { %s693_s9 = scalar_lea.vmem %s720_s3, %s520_s21 }
  0x17   : > { %240 = vst.msk [vmem:[%s693_s9] sm:$0xf] %vm238_vm0, %v622_v0 }
  0x18 PF: > { %v241_v1 = vld [vmem:[%s217_s30] sm:$0xff]  ;;  %v623_v3 = vmov 0.0   ;;  %vm624_vm1 = vmmov 0   ;;  %vm316_vm2 = vcmask 60416  }
  0x19   : > { %v242_v2 = vld [vmem:[%s225_s6] sm:$0x3]  ;;  %529 = vmatprep.subr.mxu0 %v623_v3  ;;  %534 = vmatprep.subr.mxu1 %v623_v3  ;;  %v319_v4 = vmul.f32 %v241_v1, %v241_v1 }
  0x1a   : > { %v243_v5 = vunpack.c.l.bf16 %v242_v2  ;;  %530 = vmatpush3.xpose.msra.mxu0 %v241_v1  ;;  %531 = vmatprep.mubr.msk.f32.mxu0 %vm624_vm1, %v623_v3 }
  0x1b   : > { %535 = vmatpush3.xpose.msra.mxu1 %v319_v4  ;;  %536 = vmatprep.mubr.msk.f32.mxu1 %vm624_vm1, %v623_v3 }
  0x1c   : > { %v244_v6 = vld [vmem:[%s682_s25] sm:$0xf] }
  0x1d   : > { %532 = vmatmul.mubr.f32.vlgmr.msra.gmra.mrb[0].mxu0 %v243_v5 }
  0x1e   : > { %537 = vmatmul.mubr.f32.vlgmr.msra.gmra.mrb[0].mxu1 %v243_v5  ;;  %v318_v7 = vld [vmem:[%s693_s9] sm:$0xf] }
  0xf0   : > { %v311_v8 = vpop.f32.mrb[0].mxu0 }
  0xf1   : > { %v315_v9 = vadd.f32 %v311_v8, %v244_v6  ;;  %v533_v10 = vpop.f32.mrb[1].mxu0  ;;  %v386_v11 = vpop.f32.mrb[0].mxu1 }
  0xf2   : > { %v390_v12 = vadd.f32 %v386_v11, %v318_v7  ;;  %v538_v13 = vpop.f32.mrb[1].mxu1 }
  0xf3   : > { %317 = vst.msk [vmem:[%s682_s25] sm:$0xf] %vm316_vm2, %v315_v9 }
  0xf4   : > { %391 = vst.msk [vmem:[%s693_s9] sm:$0xf] %vm316_vm2, %v390_v12 }
  0xf5 PF: > { %s14_s16 = sadd.s32 1, %s620_s16   ;;  %s721_s12 = smov %s612_s14 }
  0xf6   : > { %p11_p8 = scmp.ge.s32.totalorder %s14_s16, 6   ;;  %s722_s13 = smov %s616_s15 }
  0xf7   : > { %s723_s14 = smov %s726_s17  ;;  %s724_s15 = smov %s730_s18 }
  0xf8   :  { %13 = sbr.rel (!%p11_p8) target bundleno = 3 (0x3), region = 77 }

// kernel: instance_embedding_loss.3
= control target key start
LH: loop header
LB: loop body
LE: loop exit
PB: predicated region body
PF: predicated region fallthrough
CT: control target
= control target key end

     0   :  { %s465_s9 = smov 0   ;;  %s467_s10 = smov 0   ;;  %s527_s0 = inlined_call_operand.vmem [shape: f32[2,4,8], index: 0, kind: input, shape index: {}]   ;;  %s528_s1 = inlined_call_operand.vmem [shape: f32[2,8,256], index: 1, kind: input, shape index: {}]   ;;  %s529_s2 = inlined_call_operand.vmem [shape: bf16[2,4,256], index: 2, kind: output, shape index: {}]  }
   0x1   :  { %s469_s11 = smov 0   ;;  %s471_s12 = smov 0  }
   0x2   :  { %s473_s13 = smov 0  }
   0x3 LB: > { %s21_s14 = sadd.s32 1, %s435_s11  ;;  %s24_s15 = sadd.s32 1, %s439_s12  ;;  %s443_s13 = sphi %s473_s13, %s12_s13   ;;  %s439_s12 = sphi %s471_s12, %s533_s12   ;;  %s435_s11 = sphi %s469_s11, %s532_s11   ;;  %s431_s10 = sphi %s467_s10, %s531_s10   ;;  %s427_s9 = sphi %s465_s9, %s530_s9  }
   0x4   : > { %p22_p0 = scmp.ge.s32.totalorder %s21_s14, 2  ;;  %p343_p1 = scmp.ge.s32.totalorder %s443_s13, 1 }
   0x5   : > { %p140_p2 = scmp.lt.s32.totalorder %s443_s13, 5 }
   0x6   : > { %s535_s14 = smov (%p22_p0, %s21_s14), 0  ;;  %s537_s15 = smov (!%p22_p0, %s24_s15), %s439_s12 }
   0x7   : > { %p141_p3 = pnand %p343_p1, %p140_p2  ;;  %p26_p4 = scmp.ge.s32.totalorder %s537_s15, 2 }
   0x8   : > { %p172_p5 = scmp.lt.s32.totalorder (!%p141_p3), %s431_s10, 1  ;;  %v445_v0 = vmov (!%p141_p3), 2   ;;  %v446_v1 = vmov (!%p141_p3), 0   ;;  %v447_v3 = vmov (!%p141_p3), 3   ;;  %v448_v4 = vmov (!%p141_p3), 1   ;;  %p178_p6 = scmp.lt.s32.totalorder (!%p141_p3), %s427_s9, 1 }
   0x9   : > { %s539_s15 = smov (%p26_p4, %s537_s15), 0  ;;  %144 = sbr.rel (%p141_p3) target bundleno = 187 (0xbb), region = 28 }
   0xa   : > { %399 = vset.pattern.permute.xlu1 (!%p141_p3), %v445_v0  ;;  %397 = vset.pattern.permute.xlu0 (!%p141_p3), %v446_v1  ;;  %v449_v5 = vmov (!%p141_p3), 4   ;;  %v194_v6 = vlaneseq (!%p141_p3) }
   0xc   : > { %v195_v7 = vshrl.u32 (!%p141_p3), %v194_v6, 7 }
   0xe   : > { %v196_v8 = vsub.s32 (!%p141_p3), 2, %v195_v7  ;;  %v206_v11 = vsub.s32 (!%p141_p3), 3, %v195_v7 }
  0x10   : > { %s541_s10 = smov (!%p172_p5, %s431_s10), 1  ;;  %s543_s9 = smov (!%p178_p6, %s427_s9), 1 }
  0x11   : > { %s344_s16 = sshll.u32 %s541_s10, 2  ;;  %s345_s20 = sshll.u32 %s541_s10, 1 }
  0x12   : > { %s175_s19 = scalar_lea.vmem %s527_s0, %s344_s16  ;;  %s502_s21 = sadd.s32 %s345_s20, %s543_s9 }
  0x13   : > { %v192_v2 = vld [vmem:[%s175_s19] sm:$0xf]  ;;  %s346_s22 = sshll.u32 %s502_s21, 3  ;;  %s348_s26 = sshll.u32 %s502_s21, 1 }
  0x14   : > { %216 = vperm.xlu1 %399, %v192_v2   ;;  %200 = vperm.xlu0 %397, %v192_v2   ;;  %s183_s25 = scalar_lea.vmem %s528_s1, %s346_s22  ;;  %s191_s29 = scalar_lea.vmem %s529_s2, %s348_s26 }
  0x15   : > { %v193_v9 = vld [vmem:[%s183_s25] sm:$0xff] }
  0x16   : > { %v197_v10 = vrot.slane %v193_v9, %v196_v8  ;;  %v207_v15 = vrot.slane %v193_v9, %v206_v11 }
  0x18   : > { %400 = vset.pattern.permute.xlu1 %v447_v3  ;;  %398 = vset.pattern.permute.xlu0 %v448_v4 }
  0x19   : > { %221 = vperm.xlu1 %400, %v192_v2   ;;  %209 = vperm.xlu0 %398, %v192_v2  }
  0x1d   : > { %401 = vset.pattern.permute.xlu1 %v449_v5  ;;  %402 = vset.pattern.permute.xlu0 %v449_v5 }
  0x1e   : > { %228 = vperm.xlu1 %401, %v192_v2  }
  0x93   : > { %v201_v12 = vpop.permute.xlu0 %200  ;;  %v217_v13 = vpop.permute.xlu1 %216 }
  0x94   : > { %v203_v14 = vsub.f32 %v197_v10, %v201_v12 }
  0x96   : > { %v213_v18 = vmul.f32 %v203_v14, %v203_v14 }
  0x98   : > { %v210_v16 = vpop.permute.xlu0 %209  ;;  %v222_v17 = vpop.permute.xlu1 %221  ;;  %v219_v21 = vmul.f32 %v217_v13, %v213_v18 }
  0x99   : > { %v212_v19 = vsub.f32 %v207_v15, %v210_v16 }
  0x9b   : > { %v214_v20 = vmul.f32 %v212_v19, %v212_v19 }
  0x9d   : > { %v224_v22 = vmul.f32 %v222_v17, %v214_v20  ;;  %v229_v23 = vpop.permute.xlu1 %228 }
  0x9e   : > { %v231_v24 = vmul.f32 %v229_v23, %v214_v20 }
  0x9f   : > { %v225_v25 = vadd.f32 %v224_v22, %v219_v21 }
  0xa0   : > { %v232_v26 = vmul.f32 %v231_v24, %v214_v20 }
  0xa1   : > { %v226_v27 = vmul.f32 %v225_v25, %v213_v18 }
  0xa3   : > { %v233_v28 = vadd.f32 %v232_v26, %v226_v27 }
  0xa5   : > { %v234_v29 = vsub.f32 0.0, %v233_v28 }
  0xa7   : > { %v235_v30 = vmul.f32 1.442695, %v234_v29 }
  0xa9   : > { %403 = vpow2.f32 %v235_v30 }
  0xb3   : > { %v404_v31 = vpop.eup %403 }
  0xb4   : > { %v237_v32 = vmul.f32 2.0, %v404_v31 }
  0xb6   : > { %v349_v33 = vadd.f32 -1.0, %v237_v32 }
  0xb8   : > { %v239_v34 = vpack.c.bf16 %v349_v33, %v349_v33 }
  0xba   : > { %240 = vst [vmem:[%s191_s29] sm:$0x3] %v239_v34 }
  0xbb PF: > { %s12_s13 = sadd.s32 1, %s443_s13   ;;  %s530_s9 = smov %s435_s11 }
  0xbc   : > { %p9_p7 = scmp.ge.s32.totalorder %s12_s13, 6   ;;  %s531_s10 = smov %s439_s12 }
  0xbd   : > { %s532_s11 = smov %s535_s14  ;;  %s533_s12 = smov %s539_s15 }
  0xbe   :  { %11 = sbr.rel (!%p9_p7) target bundleno = 3 (0x3), region = 61 }

</bundles_post_ra>
